<compile_context>
chip_gen: v5e
topology: v5e:2x2
jax: 0.10.0
libtpu: 0.0.40
codegen_flags: <defaults>
</compile_context>

<pallas_src>
import functools
import math

import jax
import jax.numpy as jnp
from jax.experimental import pallas as pl
from jax.experimental.pallas import tpu as pltpu


def _layer_norm(x, gamma, beta, eps=1e-5):
    # x: (S, D) f32, gamma/beta: (1, D).  Biased variance (matches torch.nn.LayerNorm).
    mean = jnp.mean(x, axis=-1, keepdims=True)
    var = jnp.mean((x - mean) ** 2, axis=-1, keepdims=True)
    return (x - mean) * jax.lax.rsqrt(var + eps) * gamma + beta


def _encoder_kernel(x_ref,
                    g1_ref, be1_ref,
                    wqkv_ref, bqkv_ref,
                    wo_ref, bo_ref,
                    g2_ref, be2_ref,
                    w1_ref, b1_ref, w2_ref, b2_ref,
                    o_ref,
                    ctx_ref,
                    *, num_heads):
    x = x_ref[0]                                    # (S, D), native dtype
    S, D = x.shape
    H = num_heads
    hd = D // H
    w_dt = wqkv_ref.dtype                           # MXU operand dtype (bf16-ready)
    f32 = jnp.float32

    x32 = x.astype(f32)

    # ---- LayerNorm 1 (elementwise math in f32, MXU operand cast back to param dtype) ----
    y = _layer_norm(x32, g1_ref[...].astype(f32), be1_ref[...].astype(f32)).astype(w_dt)

    # ---- Single lane-dense QKV projection: (S, D) @ (D, 3D) -> (S, 3D), f32 accumulation.
    # 1/sqrt(hd) already folded into the q columns / q bias on the host.
    qkv = jnp.dot(y, wqkv_ref[...], preferred_element_type=f32) + bqkv_ref[...].astype(f32)

    # ---- Per-head scaled dot-product attention via static lane slices.
    # Scores are only (S, S) f32 per head (never (H, S, S)); per-head context is written
    # into the (S, D) VMEM scratch so the output projection is one dense matmul.
    for h in range(H):                              # H is a compile-time constant
        lo = h * hd
        q_h = qkv[:, lo:lo + hd].astype(w_dt)                     # (S, hd)
        k_h = qkv[:, D + lo:D + lo + hd].astype(w_dt)             # (S, hd)
        v_h = qkv[:, 2 * D + lo:2 * D + lo + hd].astype(w_dt)     # (S, hd)

        s = jnp.einsum('qe,ke->qk', q_h, k_h,
                       preferred_element_type=f32)                # (S, S)
        s = s - jnp.max(s, axis=-1, keepdims=True)
        p = jnp.exp(s)
        l = jnp.sum(p, axis=-1, keepdims=True)                    # (S, 1)
        c = jnp.dot(p.astype(w_dt), v_h,
                    preferred_element_type=f32)                   # (S, hd)
        # Normalise the small (S, hd) context, not the (S, S) probabilities; EUP recip.
        ctx_ref[:, lo:lo + hd] = (c * pl.reciprocal(l, approx=True)).astype(w_dt)

    # ---- Single lane-dense output projection: (S, D) @ (D, D) -> (S, D) ----
    attn = jnp.dot(ctx_ref[...], wo_ref[...],
                   preferred_element_type=f32) + bo_ref[...].astype(f32)

    # ---- Residual 1 (dropout / DropPath are identity in eval) ----
    x1 = x32 + attn

    # ---- LayerNorm 2 + FFN: Linear(D, dff) -> GELU -> Linear(dff, D) ----
    # TODO(synk): FeedForward is not defined in the source module; assuming
    #             Linear -> GELU (tanh approx) -> Linear with dropout=identity. If the real
    #             FFN uses torch.nn.GELU() (exact erf), switch to approximate=False here and
    #             in the reference.
    y2 = _layer_norm(x1, g2_ref[...].astype(f32), be2_ref[...].astype(f32)).astype(w_dt)
    h1 = jnp.dot(y2, w1_ref[...], preferred_element_type=f32) + b1_ref[...].astype(f32)
    h1 = jax.nn.gelu(h1, approximate=True)
    ffn = jnp.dot(h1.astype(w_dt), w2_ref[...],
                  preferred_element_type=f32) + b2_ref[...].astype(f32)

    # ---- Residual 2 ----
    o_ref[0] = (x1 + ffn).astype(o_ref.dtype)


def _vmem_limit_bytes():
    # Per-generation scoped-VMEM limit: ~75% of physical VMEM
    # (v5e/v6e: 128 MiB -> 96 MiB, v7x: 64 MiB -> 48 MiB).
    try:
        cap = int(pltpu.get_tpu_info().vmem_capacity_bytes)
    except Exception:
        cap = 64 * 1024 * 1024                      # conservative (v7x-sized) fallback
    return max(32 * 1024 * 1024, (cap * 3) // 4)


def encoder_block(x, params, num_heads):
    """x: (B, S, D).  params: dict of weights in PyTorch layout (out_features, in_features)."""
    B, S, D = x.shape
    H = num_heads
    hd = D // H
    dff = params["w1"].shape[0]
    scale = 1.0 / math.sqrt(hd)
    w_dtype = params["wqkv"].dtype

    # ---- One-time host-side weight layout changes (kernel never transposes weights) ----
    # PyTorch in_proj_weight is (3D, D) = [Wq; Wk; Wv]; transpose once to (D, 3D) and fold
    # the 1/sqrt(hd) attention scale into the q columns / q bias.
    col_scale = jnp.concatenate([jnp.full((D,), scale, dtype=jnp.float32),
                                 jnp.ones((2 * D,), dtype=jnp.float32)]).astype(w_dtype)
    wqkv_t = jnp.transpose(params["wqkv"]) * col_scale[None, :]        # (D, 3D)
    bqkv = params["bqkv"].reshape(1, 3 * D) * col_scale[None, :]       # (1, 3D)

    wo_t = jnp.transpose(params["wo"])               # (D, D)
    bo = params["bo"].reshape(1, D)
    w1_t = jnp.transpose(params["w1"])               # (D, dff)
    b1 = params["b1"].reshape(1, dff)
    w2_t = jnp.transpose(params["w2"])               # (dff, D)
    b2 = params["b2"].reshape(1, D)
    g1 = params["g1"].reshape(1, D)
    be1 = params["be1"].reshape(1, D)
    g2 = params["g2"].reshape(1, D)
    be2 = params["be2"].reshape(1, D)

    def wspec(shape):
        # Constant across the batch grid -> single-buffer (no dead 2nd DMA buffer).
        return pl.BlockSpec(shape, lambda b: (0,) * len(shape),
                            pipeline_mode=pl.Buffered(1))

    in_specs = [
        pl.BlockSpec((1, S, D), lambda b: (b, 0, 0)),   # x (grid-varying -> double-buffered)
        wspec((1, D)), wspec((1, D)),                   # ln1 gamma, beta
        wspec((D, 3 * D)), wspec((1, 3 * D)),           # Wqkv^T (q cols pre-scaled), bqkv
        wspec((D, D)), wspec((1, D)),                   # Wo^T, bo
        wspec((1, D)), wspec((1, D)),                   # ln2 gamma, beta
        wspec((D, dff)), wspec((1, dff)),               # ffn W1^T, b1
        wspec((dff, D)), wspec((1, D)),                 # ffn W2^T, b2
    ]

    kernel = functools.partial(_encoder_kernel, num_heads=H)

    return pl.pallas_call(
        kernel,
        out_shape=jax.ShapeDtypeStruct((B, S, D), x.dtype),
        grid_spec=pltpu.PrefetchScalarGridSpec(
            num_scalar_prefetch=0,
            grid=(B,),
            in_specs=in_specs,
            out_specs=pl.BlockSpec((1, S, D), lambda b: (b, 0, 0)),
            scratch_shapes=[pltpu.VMEM((S, D), w_dtype)],   # per-head contexts -> one (S,D) slab
        ),
        compiler_params=pltpu.CompilerParams(
            dimension_semantics=("parallel",),
            vmem_limit_bytes=_vmem_limit_bytes(),
        ),
    )(x,
      g1, be1,
      wqkv_t, bqkv,
      wo_t, bo,
      g2, be2,
      w1_t, b1, w2_t, b2)


def _reference(x, params, num_heads):
    # Pure-JAX reference with identical math (PyTorch weight layout), for sanity checking.
    def ln(v, g, b):
        m = jnp.mean(v, -1, keepdims=True)
        var = jnp.mean((v - m) ** 2, -1, keepdims=True)
        return (v - m) * jax.lax.rsqrt(var + 1e-5) * g + b

    B, S, D = x.shape
    hd = D // num_heads
    y = ln(x, params["g1"], params["be1"])
    qkv = y @ params["wqkv"].T + params["bqkv"]
    q, k, v = jnp.split(qkv, 3, axis=-1)

    def heads(t):  # (B,S,D) -> (B,H,S,hd)
        return t.reshape(B, S, num_heads, hd).transpose(0, 2, 1, 3)

    qh, kh, vh = heads(q), heads(k), heads(v)
    s = jnp.einsum("bhqd,bhkd->bhqk", qh, kh) / math.sqrt(hd)
    p = jax.nn.softmax(s, axis=-1)
    o = jnp.einsum("bhqk,bhkd->bhqd", p, vh).transpose(0, 2, 1, 3).reshape(B, S, D)
    attn = o @ params["wo"].T + params["bo"]
    x1 = x + attn
    y2 = ln(x1, params["g2"], params["be2"])
    f = (jax.nn.gelu(y2 @ params["w1"].T + params["b1"], approximate=True)
         @ params["w2"].T + params["b2"])
    return x1 + f


if __name__ == "__main__":
    B, S, D = 2, 8, 32      # batch, sequence, dimensionality
    H = 4                   # num_heads
    DFF = 64                # dff

    key = jax.random.PRNGKey(0)
    keys = jax.random.split(key, 10)

    x = jax.random.normal(keys[0], (B, S, D), dtype=jnp.float32)

    def init(k, shape, scale=0.1):
        return (scale * jax.random.normal(k, shape)).astype(jnp.float32)

    params = {
        "g1":   jnp.ones((1, D), jnp.float32),
        "be1":  jnp.zeros((1, D), jnp.float32),
        "wqkv": init(keys[1], (3 * D, D)),
        "bqkv": init(keys[2], (1, 3 * D)),
        "wo":   init(keys[3], (D, D)),
        "bo":   init(keys[4], (1, D)),
        "g2":   jnp.ones((1, D), jnp.float32),
        "be2":  jnp.zeros((1, D), jnp.float32),
        "w1":   init(keys[5], (DFF, D)),
        "b1":   init(keys[6], (1, DFF)),
        "w2":   init(keys[7], (D, DFF)),
        "b2":   init(keys[8], (1, D)),
    }

    out = jax.block_until_ready(encoder_block(x, params, num_heads=H))
    ref = jax.block_until_ready(_reference(x, params, num_heads=H))

    assert out.shape == (B, S, D)
    err = float(jnp.max(jnp.abs(out - ref)))
    # Tolerance accounts for the EUP approximate reciprocal used in softmax normalisation
    # (deliberate perf/accuracy tradeoff; re-validate in bf16 at production S before relying
    # on exact parity).
    assert err < 2e-3, f"mismatch vs pure-JAX reference: {err}"

    print("KERNEL_OK")
</pallas_src>

<mosaic_0001>
module attributes {stable_mosaic.version = 11 : i64} {
  func.func @_encoder_kernel(%arg0: i32, %arg1: memref<1x8x32xf32, #tpu.memory_space<vmem>>, %arg2: memref<1x32xf32, #tpu.memory_space<vmem>>, %arg3: memref<1x32xf32, #tpu.memory_space<vmem>>, %arg4: memref<32x96xf32, #tpu.memory_space<vmem>>, %arg5: memref<1x96xf32, #tpu.memory_space<vmem>>, %arg6: memref<32x32xf32, #tpu.memory_space<vmem>>, %arg7: memref<1x32xf32, #tpu.memory_space<vmem>>, %arg8: memref<1x32xf32, #tpu.memory_space<vmem>>, %arg9: memref<1x32xf32, #tpu.memory_space<vmem>>, %arg10: memref<32x64xf32, #tpu.memory_space<vmem>>, %arg11: memref<1x64xf32, #tpu.memory_space<vmem>>, %arg12: memref<64x32xf32, #tpu.memory_space<vmem>>, %arg13: memref<1x32xf32, #tpu.memory_space<vmem>>, %arg14: memref<1x8x32xf32, #tpu.memory_space<vmem>>, %arg15: memref<8x32xf32, #tpu.memory_space<vmem>>) attributes {dimension_semantics = [#tpu.dimension_semantics<parallel>], iteration_bounds = array<i64: 2>, scalar_prefetch = 0 : i64, scratch_operands = 1 : i64, tpu.core_type = #tpu.core_type<tc>, window_params = [{transform_indices = @transform_0, window_bounds = array<i64: 1, 8, 32>}, {pipeline_mode = #tpu.pipeline_mode<synchronous>, transform_indices = @transform_1, window_bounds = array<i64: 1, 32>}, {pipeline_mode = #tpu.pipeline_mode<synchronous>, transform_indices = @transform_2, window_bounds = array<i64: 1, 32>}, {pipeline_mode = #tpu.pipeline_mode<synchronous>, transform_indices = @transform_3, window_bounds = array<i64: 32, 96>}, {pipeline_mode = #tpu.pipeline_mode<synchronous>, transform_indices = @transform_4, window_bounds = array<i64: 1, 96>}, {pipeline_mode = #tpu.pipeline_mode<synchronous>, transform_indices = @transform_5, window_bounds = array<i64: 32, 32>}, {pipeline_mode = #tpu.pipeline_mode<synchronous>, transform_indices = @transform_6, window_bounds = array<i64: 1, 32>}, {pipeline_mode = #tpu.pipeline_mode<synchronous>, transform_indices = @transform_7, window_bounds = array<i64: 1, 32>}, {pipeline_mode = #tpu.pipeline_mode<synchronous>, transform_indices = @transform_8, window_bounds = array<i64: 1, 32>}, {pipeline_mode = #tpu.pipeline_mode<synchronous>, transform_indices = @transform_9, window_bounds = array<i64: 32, 64>}, {pipeline_mode = #tpu.pipeline_mode<synchronous>, transform_indices = @transform_10, window_bounds = array<i64: 1, 64>}, {pipeline_mode = #tpu.pipeline_mode<synchronous>, transform_indices = @transform_11, window_bounds = array<i64: 64, 32>}, {pipeline_mode = #tpu.pipeline_mode<synchronous>, transform_indices = @transform_12, window_bounds = array<i64: 1, 32>}, {transform_indices = @transform_13, window_bounds = array<i64: 1, 8, 32>}]} {
    %c0 = arith.constant 0 : index
    %c0_0 = arith.constant 0 : index
    %c0_1 = arith.constant 0 : index
    %0 = vector.load %arg1[%c0, %c0_0, %c0_1] : memref<1x8x32xf32, #tpu.memory_space<vmem>>, vector<1x8x32xf32>
    %1 = vector.shape_cast %0 : vector<1x8x32xf32> to vector<8x32xf32>
    %c0_2 = arith.constant 0 : index
    %c0_3 = arith.constant 0 : index
    %2 = vector.load %arg2[%c0_2, %c0_3] : memref<1x32xf32, #tpu.memory_space<vmem>>, vector<1x32xf32>
    %c0_4 = arith.constant 0 : index
    %c0_5 = arith.constant 0 : index
    %3 = vector.load %arg3[%c0_4, %c0_5] : memref<1x32xf32, #tpu.memory_space<vmem>>, vector<1x32xf32>
    %cst = arith.constant dense<0.000000e+00> : vector<8xf32>
    %4 = vector.multi_reduction <add>, %1, %cst [1] : vector<8x32xf32> to vector<8xf32>
    %5 = vector.shape_cast %4 : vector<8xf32> to vector<8x1xf32>
    %cst_6 = arith.constant 3.200000e+01 : f32
    %6 = vector.broadcast %cst_6 : f32 to vector<8x1xf32>
    %7 = arith.divf %5, %6 : vector<8x1xf32>
    %8 = vector.broadcast %7 : vector<8x1xf32> to vector<8x32xf32>
    %9 = arith.subf %1, %8 : vector<8x32xf32>
    %10 = arith.mulf %9, %9 : vector<8x32xf32>
    %cst_7 = arith.constant dense<0.000000e+00> : vector<8xf32>
    %11 = vector.multi_reduction <add>, %10, %cst_7 [1] : vector<8x32xf32> to vector<8xf32>
    %12 = vector.shape_cast %11 : vector<8xf32> to vector<8x1xf32>
    %cst_8 = arith.constant 3.200000e+01 : f32
    %13 = vector.broadcast %cst_8 : f32 to vector<8x1xf32>
    %14 = arith.divf %12, %13 : vector<8x1xf32>
    %15 = vector.broadcast %7 : vector<8x1xf32> to vector<8x32xf32>
    %16 = arith.subf %1, %15 : vector<8x32xf32>
    %cst_9 = arith.constant 9.99999974E-6 : f32
    %17 = vector.broadcast %cst_9 : f32 to vector<8x1xf32>
    %18 = arith.addf %14, %17 : vector<8x1xf32>
    %19 = math.rsqrt %18 : vector<8x1xf32>
    %20 = vector.broadcast %19 : vector<8x1xf32> to vector<8x32xf32>
    %21 = arith.mulf %16, %20 : vector<8x32xf32>
    %22 = vector.broadcast %2 : vector<1x32xf32> to vector<8x32xf32>
    %23 = arith.mulf %21, %22 : vector<8x32xf32>
    %24 = vector.broadcast %3 : vector<1x32xf32> to vector<8x32xf32>
    %25 = arith.addf %23, %24 : vector<8x32xf32>
    %c0_10 = arith.constant 0 : index
    %c0_11 = arith.constant 0 : index
    %26 = vector.load %arg4[%c0_10, %c0_11] : memref<32x96xf32, #tpu.memory_space<vmem>>, vector<32x96xf32>
    %cst_12 = arith.constant dense<0.000000e+00> : vector<8x96xf32>
    %27 = tpu.matmul %25, %26, %cst_12 {dimension_numbers = #tpu.dot_dimension_numbers<[1], [0], [0], [1], [0, 0, 1, 1], [], []>} : vector<8x32xf32>, vector<32x96xf32>, vector<8x96xf32> -> vector<8x96xf32>
    %c0_13 = arith.constant 0 : index
    %c0_14 = arith.constant 0 : index
    %28 = vector.load %arg5[%c0_13, %c0_14] : memref<1x96xf32, #tpu.memory_space<vmem>>, vector<1x96xf32>
    %29 = vector.broadcast %28 : vector<1x96xf32> to vector<8x96xf32>
    %30 = arith.addf %27, %29 : vector<8x96xf32>
    %31 = vector.extract_strided_slice %30 {offsets = [0, 0], sizes = [8, 8], strides = [1, 1]} : vector<8x96xf32> to vector<8x8xf32>
    %32 = vector.extract_strided_slice %30 {offsets = [0, 32], sizes = [8, 8], strides = [1, 1]} : vector<8x96xf32> to vector<8x8xf32>
    %33 = vector.extract_strided_slice %30 {offsets = [0, 64], sizes = [8, 8], strides = [1, 1]} : vector<8x96xf32> to vector<8x8xf32>
    "tpu.trace_start"() <{level = 10 : i32, message = "qe,ke->qk"}> : () -> ()
    %cst_15 = arith.constant dense<0.000000e+00> : vector<8x8xf32>
    %34 = tpu.matmul %31, %32, %cst_15 {dimension_numbers = #tpu.dot_dimension_numbers<[1], [1], [0], [0], [0, 0, 1, 0], [], []>} : vector<8x8xf32>, vector<8x8xf32>, vector<8x8xf32> -> vector<8x8xf32>
    "tpu.trace_stop"() : () -> ()
    %cst_16 = arith.constant dense<0xFF800000> : vector<8xf32>
    %35 = vector.multi_reduction <maximumf>, %34, %cst_16 [1] : vector<8x8xf32> to vector<8xf32>
    %36 = vector.shape_cast %35 : vector<8xf32> to vector<8x1xf32>
    %37 = vector.broadcast %36 : vector<8x1xf32> to vector<8x8xf32>
    %38 = arith.subf %34, %37 : vector<8x8xf32>
    %39 = math.exp %38 : vector<8x8xf32>
    %cst_17 = arith.constant dense<0.000000e+00> : vector<8xf32>
    %40 = vector.multi_reduction <add>, %39, %cst_17 [1] : vector<8x8xf32> to vector<8xf32>
    %41 = vector.shape_cast %40 : vector<8xf32> to vector<8x1xf32>
    %cst_18 = arith.constant dense<0.000000e+00> : vector<8x8xf32>
    %42 = tpu.matmul %39, %33, %cst_18 {dimension_numbers = #tpu.dot_dimension_numbers<[1], [0], [0], [1], [0, 0, 1, 1], [], []>} : vector<8x8xf32>, vector<8x8xf32>, vector<8x8xf32> -> vector<8x8xf32>
    %43 = tpu.reciprocal %41 {approx = true} : vector<8x1xf32> -> vector<8x1xf32>
    %44 = vector.broadcast %43 : vector<8x1xf32> to vector<8x8xf32>
    %45 = arith.mulf %42, %44 : vector<8x8xf32>
    %c0_19 = arith.constant 0 : index
    %c0_20 = arith.constant 0 : index
    %46 = vector.load %arg15[%c0_19, %c0_20] : memref<8x32xf32, #tpu.memory_space<vmem>>, vector<8x8xf32>
    tpu.vector_store %arg15[%c0_19, %c0_20], %45 {strides = array<i32>} : memref<8x32xf32, #tpu.memory_space<vmem>>, vector<8x8xf32>,
    %47 = vector.extract_strided_slice %30 {offsets = [0, 8], sizes = [8, 8], strides = [1, 1]} : vector<8x96xf32> to vector<8x8xf32>
    %48 = vector.extract_strided_slice %30 {offsets = [0, 40], sizes = [8, 8], strides = [1, 1]} : vector<8x96xf32> to vector<8x8xf32>
    %49 = vector.extract_strided_slice %30 {offsets = [0, 72], sizes = [8, 8], strides = [1, 1]} : vector<8x96xf32> to vector<8x8xf32>
    "tpu.trace_start"() <{level = 10 : i32, message = "qe,ke->qk"}> : () -> ()
    %cst_21 = arith.constant dense<0.000000e+00> : vector<8x8xf32>
    %50 = tpu.matmul %47, %48, %cst_21 {dimension_numbers = #tpu.dot_dimension_numbers<[1], [1], [0], [0], [0, 0, 1, 0], [], []>} : vector<8x8xf32>, vector<8x8xf32>, vector<8x8xf32> -> vector<8x8xf32>
    "tpu.trace_stop"() : () -> ()
    %cst_22 = arith.constant dense<0xFF800000> : vector<8xf32>
    %51 = vector.multi_reduction <maximumf>, %50, %cst_22 [1] : vector<8x8xf32> to vector<8xf32>
    %52 = vector.shape_cast %51 : vector<8xf32> to vector<8x1xf32>
    %53 = vector.broadcast %52 : vector<8x1xf32> to vector<8x8xf32>
    %54 = arith.subf %50, %53 : vector<8x8xf32>
    %55 = math.exp %54 : vector<8x8xf32>
    %cst_23 = arith.constant dense<0.000000e+00> : vector<8xf32>
    %56 = vector.multi_reduction <add>, %55, %cst_23 [1] : vector<8x8xf32> to vector<8xf32>
    %57 = vector.shape_cast %56 : vector<8xf32> to vector<8x1xf32>
    %cst_24 = arith.constant dense<0.000000e+00> : vector<8x8xf32>
    %58 = tpu.matmul %55, %49, %cst_24 {dimension_numbers = #tpu.dot_dimension_numbers<[1], [0], [0], [1], [0, 0, 1, 1], [], []>} : vector<8x8xf32>, vector<8x8xf32>, vector<8x8xf32> -> vector<8x8xf32>
    %59 = tpu.reciprocal %57 {approx = true} : vector<8x1xf32> -> vector<8x1xf32>
    %60 = vector.broadcast %59 : vector<8x1xf32> to vector<8x8xf32>
    %61 = arith.mulf %58, %60 : vector<8x8xf32>
    %c0_25 = arith.constant 0 : index
    %c8 = arith.constant 8 : index
    %62 = vector.load %arg15[%c0_25, %c8] : memref<8x32xf32, #tpu.memory_space<vmem>>, vector<8x8xf32>
    tpu.vector_store %arg15[%c0_25, %c8], %61 {strides = array<i32>} : memref<8x32xf32, #tpu.memory_space<vmem>>, vector<8x8xf32>,
    %63 = vector.extract_strided_slice %30 {offsets = [0, 16], sizes = [8, 8], strides = [1, 1]} : vector<8x96xf32> to vector<8x8xf32>
    %64 = vector.extract_strided_slice %30 {offsets = [0, 48], sizes = [8, 8], strides = [1, 1]} : vector<8x96xf32> to vector<8x8xf32>
    %65 = vector.extract_strided_slice %30 {offsets = [0, 80], sizes = [8, 8], strides = [1, 1]} : vector<8x96xf32> to vector<8x8xf32>
    "tpu.trace_start"() <{level = 10 : i32, message = "qe,ke->qk"}> : () -> ()
    %cst_26 = arith.constant dense<0.000000e+00> : vector<8x8xf32>
    %66 = tpu.matmul %63, %64, %cst_26 {dimension_numbers = #tpu.dot_dimension_numbers<[1], [1], [0], [0], [0, 0, 1, 0], [], []>} : vector<8x8xf32>, vector<8x8xf32>, vector<8x8xf32> -> vector<8x8xf32>
    "tpu.trace_stop"() : () -> ()
    %cst_27 = arith.constant dense<0xFF800000> : vector<8xf32>
    %67 = vector.multi_reduction <maximumf>, %66, %cst_27 [1] : vector<8x8xf32> to vector<8xf32>
    %68 = vector.shape_cast %67 : vector<8xf32> to vector<8x1xf32>
    %69 = vector.broadcast %68 : vector<8x1xf32> to vector<8x8xf32>
    %70 = arith.subf %66, %69 : vector<8x8xf32>
    %71 = math.exp %70 : vector<8x8xf32>
    %cst_28 = arith.constant dense<0.000000e+00> : vector<8xf32>
    %72 = vector.multi_reduction <add>, %71, %cst_28 [1] : vector<8x8xf32> to vector<8xf32>
    %73 = vector.shape_cast %72 : vector<8xf32> to vector<8x1xf32>
    %cst_29 = arith.constant dense<0.000000e+00> : vector<8x8xf32>
    %74 = tpu.matmul %71, %65, %cst_29 {dimension_numbers = #tpu.dot_dimension_numbers<[1], [0], [0], [1], [0, 0, 1, 1], [], []>} : vector<8x8xf32>, vector<8x8xf32>, vector<8x8xf32> -> vector<8x8xf32>
    %75 = tpu.reciprocal %73 {approx = true} : vector<8x1xf32> -> vector<8x1xf32>
    %76 = vector.broadcast %75 : vector<8x1xf32> to vector<8x8xf32>
    %77 = arith.mulf %74, %76 : vector<8x8xf32>
    %c0_30 = arith.constant 0 : index
    %c16 = arith.constant 16 : index
    %78 = vector.load %arg15[%c0_30, %c16] : memref<8x32xf32, #tpu.memory_space<vmem>>, vector<8x8xf32>
    tpu.vector_store %arg15[%c0_30, %c16], %77 {strides = array<i32>} : memref<8x32xf32, #tpu.memory_space<vmem>>, vector<8x8xf32>,
    %79 = vector.extract_strided_slice %30 {offsets = [0, 24], sizes = [8, 8], strides = [1, 1]} : vector<8x96xf32> to vector<8x8xf32>
    %80 = vector.extract_strided_slice %30 {offsets = [0, 56], sizes = [8, 8], strides = [1, 1]} : vector<8x96xf32> to vector<8x8xf32>
    %81 = vector.extract_strided_slice %30 {offsets = [0, 88], sizes = [8, 8], strides = [1, 1]} : vector<8x96xf32> to vector<8x8xf32>
    "tpu.trace_start"() <{level = 10 : i32, message = "qe,ke->qk"}> : () -> ()
    %cst_31 = arith.constant dense<0.000000e+00> : vector<8x8xf32>
    %82 = tpu.matmul %79, %80, %cst_31 {dimension_numbers = #tpu.dot_dimension_numbers<[1], [1], [0], [0], [0, 0, 1, 0], [], []>} : vector<8x8xf32>, vector<8x8xf32>, vector<8x8xf32> -> vector<8x8xf32>
    "tpu.trace_stop"() : () -> ()
    %cst_32 = arith.constant dense<0xFF800000> : vector<8xf32>
    %83 = vector.multi_reduction <maximumf>, %82, %cst_32 [1] : vector<8x8xf32> to vector<8xf32>
    %84 = vector.shape_cast %83 : vector<8xf32> to vector<8x1xf32>
    %85 = vector.broadcast %84 : vector<8x1xf32> to vector<8x8xf32>
    %86 = arith.subf %82, %85 : vector<8x8xf32>
    %87 = math.exp %86 : vector<8x8xf32>
    %cst_33 = arith.constant dense<0.000000e+00> : vector<8xf32>
    %88 = vector.multi_reduction <add>, %87, %cst_33 [1] : vector<8x8xf32> to vector<8xf32>
    %89 = vector.shape_cast %88 : vector<8xf32> to vector<8x1xf32>
    %cst_34 = arith.constant dense<0.000000e+00> : vector<8x8xf32>
    %90 = tpu.matmul %87, %81, %cst_34 {dimension_numbers = #tpu.dot_dimension_numbers<[1], [0], [0], [1], [0, 0, 1, 1], [], []>} : vector<8x8xf32>, vector<8x8xf32>, vector<8x8xf32> -> vector<8x8xf32>
    %91 = tpu.reciprocal %89 {approx = true} : vector<8x1xf32> -> vector<8x1xf32>
    %92 = vector.broadcast %91 : vector<8x1xf32> to vector<8x8xf32>
    %93 = arith.mulf %90, %92 : vector<8x8xf32>
    %c0_35 = arith.constant 0 : index
    %c24 = arith.constant 24 : index
    %94 = vector.load %arg15[%c0_35, %c24] : memref<8x32xf32, #tpu.memory_space<vmem>>, vector<8x8xf32>
    tpu.vector_store %arg15[%c0_35, %c24], %93 {strides = array<i32>} : memref<8x32xf32, #tpu.memory_space<vmem>>, vector<8x8xf32>,
    %c0_36 = arith.constant 0 : index
    %c0_37 = arith.constant 0 : index
    %95 = vector.load %arg15[%c0_36, %c0_37] : memref<8x32xf32, #tpu.memory_space<vmem>>, vector<8x32xf32>
    %c0_38 = arith.constant 0 : index
    %c0_39 = arith.constant 0 : index
    %96 = vector.load %arg6[%c0_38, %c0_39] : memref<32x32xf32, #tpu.memory_space<vmem>>, vector<32x32xf32>
    %cst_40 = arith.constant dense<0.000000e+00> : vector<8x32xf32>
    %97 = tpu.matmul %95, %96, %cst_40 {dimension_numbers = #tpu.dot_dimension_numbers<[1], [0], [0], [1], [0, 0, 1, 1], [], []>} : vector<8x32xf32>, vector<32x32xf32>, vector<8x32xf32> -> vector<8x32xf32>
    %c0_41 = arith.constant 0 : index
    %c0_42 = arith.constant 0 : index
    %98 = vector.load %arg7[%c0_41, %c0_42] : memref<1x32xf32, #tpu.memory_space<vmem>>, vector<1x32xf32>
    %99 = vector.broadcast %98 : vector<1x32xf32> to vector<8x32xf32>
    %100 = arith.addf %97, %99 : vector<8x32xf32>
    %101 = arith.addf %1, %100 : vector<8x32xf32>
    %c0_43 = arith.constant 0 : index
    %c0_44 = arith.constant 0 : index
    %102 = vector.load %arg8[%c0_43, %c0_44] : memref<1x32xf32, #tpu.memory_space<vmem>>, vector<1x32xf32>
    %c0_45 = arith.constant 0 : index
    %c0_46 = arith.constant 0 : index
    %103 = vector.load %arg9[%c0_45, %c0_46] : memref<1x32xf32, #tpu.memory_space<vmem>>, vector<1x32xf32>
    %cst_47 = arith.constant dense<0.000000e+00> : vector<8xf32>
    %104 = vector.multi_reduction <add>, %101, %cst_47 [1] : vector<8x32xf32> to vector<8xf32>
    %105 = vector.shape_cast %104 : vector<8xf32> to vector<8x1xf32>
    %cst_48 = arith.constant 3.200000e+01 : f32
    %106 = vector.broadcast %cst_48 : f32 to vector<8x1xf32>
    %107 = arith.divf %105, %106 : vector<8x1xf32>
    %108 = vector.broadcast %107 : vector<8x1xf32> to vector<8x32xf32>
    %109 = arith.subf %101, %108 : vector<8x32xf32>
    %110 = arith.mulf %109, %109 : vector<8x32xf32>
    %cst_49 = arith.constant dense<0.000000e+00> : vector<8xf32>
    %111 = vector.multi_reduction <add>, %110, %cst_49 [1] : vector<8x32xf32> to vector<8xf32>
    %112 = vector.shape_cast %111 : vector<8xf32> to vector<8x1xf32>
    %cst_50 = arith.constant 3.200000e+01 : f32
    %113 = vector.broadcast %cst_50 : f32 to vector<8x1xf32>
    %114 = arith.divf %112, %113 : vector<8x1xf32>
    %115 = vector.broadcast %107 : vector<8x1xf32> to vector<8x32xf32>
    %116 = arith.subf %101, %115 : vector<8x32xf32>
    %cst_51 = arith.constant 9.99999974E-6 : f32
    %117 = vector.broadcast %cst_51 : f32 to vector<8x1xf32>
    %118 = arith.addf %114, %117 : vector<8x1xf32>
    %119 = math.rsqrt %118 : vector<8x1xf32>
    %120 = vector.broadcast %119 : vector<8x1xf32> to vector<8x32xf32>
    %121 = arith.mulf %116, %120 : vector<8x32xf32>
    %122 = vector.broadcast %102 : vector<1x32xf32> to vector<8x32xf32>
    %123 = arith.mulf %121, %122 : vector<8x32xf32>
    %124 = vector.broadcast %103 : vector<1x32xf32> to vector<8x32xf32>
    %125 = arith.addf %123, %124 : vector<8x32xf32>
    %c0_52 = arith.constant 0 : index
    %c0_53 = arith.constant 0 : index
    %126 = vector.load %arg10[%c0_52, %c0_53] : memref<32x64xf32, #tpu.memory_space<vmem>>, vector<32x64xf32>
    %cst_54 = arith.constant dense<0.000000e+00> : vector<8x64xf32>
    %127 = tpu.matmul %125, %126, %cst_54 {dimension_numbers = #tpu.dot_dimension_numbers<[1], [0], [0], [1], [0, 0, 1, 1], [], []>} : vector<8x32xf32>, vector<32x64xf32>, vector<8x64xf32> -> vector<8x64xf32>
    %c0_55 = arith.constant 0 : index
    %c0_56 = arith.constant 0 : index
    %128 = vector.load %arg11[%c0_55, %c0_56] : memref<1x64xf32, #tpu.memory_space<vmem>>, vector<1x64xf32>
    %129 = vector.broadcast %128 : vector<1x64xf32> to vector<8x64xf32>
    %130 = arith.addf %127, %129 : vector<8x64xf32>
    %131 = arith.mulf %130, %130 : vector<8x64xf32>
    %132 = arith.mulf %130, %131 : vector<8x64xf32>
    %cst_57 = arith.constant 4.471500e-02 : f32
    %133 = vector.broadcast %cst_57 : f32 to vector<8x64xf32>
    %134 = arith.mulf %133, %132 : vector<8x64xf32>
    %135 = arith.addf %130, %134 : vector<8x64xf32>
    %cst_58 = arith.constant 0.797884583 : f32
    %136 = vector.broadcast %cst_58 : f32 to vector<8x64xf32>
    %137 = arith.mulf %136, %135 : vector<8x64xf32>
    %138 = math.tanh %137 : vector<8x64xf32>
    %cst_59 = arith.constant 1.000000e+00 : f32
    %139 = vector.broadcast %cst_59 : f32 to vector<8x64xf32>
    %140 = arith.addf %139, %138 : vector<8x64xf32>
    %cst_60 = arith.constant 5.000000e-01 : f32
    %141 = vector.broadcast %cst_60 : f32 to vector<8x64xf32>
    %142 = arith.mulf %141, %140 : vector<8x64xf32>
    %143 = arith.mulf %130, %142 : vector<8x64xf32>
    %c0_61 = arith.constant 0 : index
    %c0_62 = arith.constant 0 : index
    %144 = vector.load %arg12[%c0_61, %c0_62] : memref<64x32xf32, #tpu.memory_space<vmem>>, vector<64x32xf32>
    %cst_63 = arith.constant dense<0.000000e+00> : vector<8x32xf32>
    %145 = tpu.matmul %143, %144, %cst_63 {dimension_numbers = #tpu.dot_dimension_numbers<[1], [0], [0], [1], [0, 0, 1, 1], [], []>} : vector<8x64xf32>, vector<64x32xf32>, vector<8x32xf32> -> vector<8x32xf32>
    %c0_64 = arith.constant 0 : index
    %c0_65 = arith.constant 0 : index
    %146 = vector.load %arg13[%c0_64, %c0_65] : memref<1x32xf32, #tpu.memory_space<vmem>>, vector<1x32xf32>
    %147 = vector.broadcast %146 : vector<1x32xf32> to vector<8x32xf32>
    %148 = arith.addf %145, %147 : vector<8x32xf32>
    %149 = arith.addf %101, %148 : vector<8x32xf32>
    %c0_66 = arith.constant 0 : index
    %c0_67 = arith.constant 0 : index
    %c0_68 = arith.constant 0 : index
    %150 = vector.load %arg14[%c0_66, %c0_67, %c0_68] : memref<1x8x32xf32, #tpu.memory_space<vmem>>, vector<1x8x32xf32>
    %151 = vector.shape_cast %150 : vector<1x8x32xf32> to vector<8x32xf32>
    %152 = vector.shape_cast %149 : vector<8x32xf32> to vector<1x8x32xf32>
    tpu.vector_store %arg14[%c0_66, %c0_67, %c0_68], %152 {strides = array<i32>} : memref<1x8x32xf32, #tpu.memory_space<vmem>>, vector<1x8x32xf32>,
    return
  }
  func.func @transform_0(%arg0: i32) -> (i32, i32, i32) {
    %c0_i32 = arith.constant 0 : i32
    %c0_i32_0 = arith.constant 0 : i32
    %c0_i32_1 = arith.constant 0 : i32
    return %arg0, %c0_i32, %c0_i32_0 : i32, i32, i32
  }
  func.func @transform_1(%arg0: i32) -> (i32, i32) {
    %c0_i32 = arith.constant 0 : i32
    %c0_i32_0 = arith.constant 0 : i32
    %c0_i32_1 = arith.constant 0 : i32
    return %c0_i32, %c0_i32_0 : i32, i32
  }
  func.func @transform_2(%arg0: i32) -> (i32, i32) {
    %c0_i32 = arith.constant 0 : i32
    %c0_i32_0 = arith.constant 0 : i32
    %c0_i32_1 = arith.constant 0 : i32
    return %c0_i32, %c0_i32_0 : i32, i32
  }
  func.func @transform_3(%arg0: i32) -> (i32, i32) {
    %c0_i32 = arith.constant 0 : i32
    %c0_i32_0 = arith.constant 0 : i32
    %c0_i32_1 = arith.constant 0 : i32
    return %c0_i32, %c0_i32_0 : i32, i32
  }
  func.func @transform_4(%arg0: i32) -> (i32, i32) {
    %c0_i32 = arith.constant 0 : i32
    %c0_i32_0 = arith.constant 0 : i32
    %c0_i32_1 = arith.constant 0 : i32
    return %c0_i32, %c0_i32_0 : i32, i32
  }
  func.func @transform_5(%arg0: i32) -> (i32, i32) {
    %c0_i32 = arith.constant 0 : i32
    %c0_i32_0 = arith.constant 0 : i32
    %c0_i32_1 = arith.constant 0 : i32
    return %c0_i32, %c0_i32_0 : i32, i32
  }
  func.func @transform_6(%arg0: i32) -> (i32, i32) {
    %c0_i32 = arith.constant 0 : i32
    %c0_i32_0 = arith.constant 0 : i32
    %c0_i32_1 = arith.constant 0 : i32
    return %c0_i32, %c0_i32_0 : i32, i32
  }
  func.func @transform_7(%arg0: i32) -> (i32, i32) {
    %c0_i32 = arith.constant 0 : i32
    %c0_i32_0 = arith.constant 0 : i32
    %c0_i32_1 = arith.constant 0 : i32
    return %c0_i32, %c0_i32_0 : i32, i32
  }
  func.func @transform_8(%arg0: i32) -> (i32, i32) {
    %c0_i32 = arith.constant 0 : i32
    %c0_i32_0 = arith.constant 0 : i32
    %c0_i32_1 = arith.constant 0 : i32
    return %c0_i32, %c0_i32_0 : i32, i32
  }
  func.func @transform_9(%arg0: i32) -> (i32, i32) {
    %c0_i32 = arith.constant 0 : i32
    %c0_i32_0 = arith.constant 0 : i32
    %c0_i32_1 = arith.constant 0 : i32
    return %c0_i32, %c0_i32_0 : i32, i32
  }
  func.func @transform_10(%arg0: i32) -> (i32, i32) {
    %c0_i32 = arith.constant 0 : i32
    %c0_i32_0 = arith.constant 0 : i32
    %c0_i32_1 = arith.constant 0 : i32
    return %c0_i32, %c0_i32_0 : i32, i32
  }
  func.func @transform_11(%arg0: i32) -> (i32, i32) {
    %c0_i32 = arith.constant 0 : i32
    %c0_i32_0 = arith.constant 0 : i32
    %c0_i32_1 = arith.constant 0 : i32
    return %c0_i32, %c0_i32_0 : i32, i32
  }
  func.func @transform_12(%arg0: i32) -> (i32, i32) {
    %c0_i32 = arith.constant 0 : i32
    %c0_i32_0 = arith.constant 0 : i32
    %c0_i32_1 = arith.constant 0 : i32
    return %c0_i32, %c0_i32_0 : i32, i32
  }
  func.func @transform_13(%arg0: i32) -> (i32, i32, i32) {
    %c0_i32 = arith.constant 0 : i32
    %c0_i32_0 = arith.constant 0 : i32
    %c0_i32_1 = arith.constant 0 : i32
    return %arg0, %c0_i32, %c0_i32_0 : i32, i32, i32
  }
}

</mosaic_0001>

<bundles_post_ra>
// kernel: tpu_custom_call.1
= control target key start
LH: loop header
LB: loop body
LE: loop exit
PB: predicated region body
PF: predicated region fallthrough
CT: control target
= control target key end

     0   :  { %s1697_s0 = inlined_call_operand.hbm [shape: f32[2,8,32], index: 0, kind: input, shape index: {}]   ;;  %s1698_s1 = inlined_call_operand.hbm [shape: f32[1,32], index: 1, kind: input, shape index: {}]   ;;  %s1699_s2 = inlined_call_operand.vmem [shape: f32[1,32], index: 2, kind: input, shape index: {}]   ;;  %s1700_s3 = inlined_call_operand.vmem [shape: f32[32,96], index: 3, kind: input, shape index: {}]   ;;  %s1701_s4 = inlined_call_operand.vmem [shape: f32[1,96], index: 4, kind: input, shape index: {}]   ;;  %s1702_s5 = inlined_call_operand.vmem [shape: f32[32,32], index: 5, kind: input, shape index: {}]   ;;  %s1703_s6 = inlined_call_operand.vmem [shape: f32[1,32], index: 6, kind: input, shape index: {}]   ;;  %s1704_s7 = inlined_call_operand.vmem [shape: f32[1,32], index: 7, kind: input, shape index: {}]   ;;  %s1705_s8 = inlined_call_operand.vmem [shape: f32[1,32], index: 8, kind: input, shape index: {}]   ;;  %s1706_s9 = inlined_call_operand.vmem [shape: f32[32,64], index: 9, kind: input, shape index: {}]   ;;  %s1707_s10 = inlined_call_operand.vmem [shape: f32[1,64], index: 10, kind: input, shape index: {}]   ;;  %s1708_s11 = inlined_call_operand.vmem [shape: f32[64,32], index: 11, kind: input, shape index: {}]   ;;  %s1709_s12 = inlined_call_operand.vmem [shape: f32[1,32], index: 12, kind: input, shape index: {}]   ;;  %s1710_s13 = inlined_call_operand.hbm [shape: f32[2,8,32], index: 13, kind: output, shape index: {}]  }
   0x1   :  { %1718 = sst [smem:[#allocation18_spill]] %s1698_s1 }
   0x2   :  { %18 = vsyncpa [#allocation4], 0 }
   0x3   :  { %20 = vsyncpa [#allocation4 + $0x1], 0 }
   0x4   :  { %21 = vsyncpa [#allocation7], 0 }
   0x5   :  { %22 = vsyncpa [#allocation5], 0 }
   0x6   :  { %24 = vsyncpa [#allocation5 + $0x1], 0  ;;  %s1415_s25 = smov 0   ;;  %s1417_s26 = smov 0  }
   0x7   :  { %s1419_s27 = smov 0   ;;  %s1421_s28 = smov 0  }
   0x8 LB: > { %1719 = sst [smem:[#allocation12_spill]] %s1315_s25  ;;  %s1436_s29 = sadd.s32 4294967295, %s1327_s28   ;;  %s1327_s28 = sphi %s1421_s28, %s1735_s28   ;;  %s1323_s27 = sphi %s1419_s27, %s1737_s27   ;;  %s1319_s26 = sphi %s1417_s26, %s1739_s26   ;;  %s1315_s25 = sphi %s1415_s25, %s1738_s25  }
   0x9   : > { %1720 = sst [smem:[#allocation13_spill]] %s1323_s27  ;;  %s1063_s30 = sadd.s32 4294967294, %s1327_s28  }
   0xa   : > { %p50_p0 = scmp.ne.s32.totalorder %s1319_s26, %s1315_s25  ;;  %p51_p1 = scmp.eq.s32.totalorder %s1436_s29, 0 }
   0xb   : > { %p326_p2 = scmp.eq.s32.totalorder %s1436_s29, 1  ;;  %p332_p3 = scmp.eq.s32.totalorder %s1063_s30, 1 }
   0xc   : > { %p1445_p4 = por %p51_p1, %p50_p0  ;;  %p1064_p5 = scmp.ge.s32.totalorder %s1327_s28, 1 }
   0xd   : > { %p1450_p6 = por %p332_p3, %p50_p0  ;;  %p339_p7 = scmp.lt.s32.totalorder %s1327_s28, 3 }
   0xe   : > { %s1724_s1 = sld [smem:[#allocation18_spill]]  ;;  %s1329_s20 = smov [#allocation6]  }
   0xf   : > { %s1722_s15 = scalar_select %p1450_p6, 1, 0 }
  0x10   : > { %p1458_p8 = pnand %p1064_p5, %p339_p7  ;;  %s353_s21 = sshll.u32 %s1329_s20, 4  ;;  %s354_s21 = int_to_ptr.vmem [resolvable:$true] %s353_s21 }
  0x11   : > { %1723 = sst [smem:[#allocation14_spill]] %s1722_s15  ;;  %s1468_s22 = sadd.s32 1, %s1327_s28  }
  0x12   : > { %p1101_p10 = pneg %p1458_p8  ;;  %1726 = sst [smem:[#allocation15_spill]] %s1468_s22 }
  0x13   : > { %s37_s23 = sadd.s32 1, %s1323_s27  ;;  %s34_s24 = ssub.s32 %s1327_s28, %s1468_s22 }
  0x14   : > { %s351_s18 = sshll.u32 %s1724_s1, 4  ;;  %p1102_p11 = pnand %p1101_p10, %p51_p1  ;;  %s352_s18 = int_to_ptr.hbm [resolvable:$true] %s351_s18 }
  0x15   : > { %p35_p12 = scmp.eq.s32.totalorder %s34_s24, 0  ;;  %p44_p13 = scmp.ne.s32.totalorder %s1323_s27, %s1319_s26 }
  0x16   : > { %1104 = dma.hbm_to_vmem [thread:$0]  (!%p1102_p11), %s352_s18, 16, %s354_s21, [#allocation7]  }
  0x17   : > { %p45_p0 = scmp.eq.s32.totalorder %s1327_s28, 0  ;;  %p1481_p3 = por %p326_p2, %p44_p13 }
  0x18   : > { %s1477_s30 = scalar_select %p35_p12, %s1323_s27, %s37_s23  }
  0x19   : > { %s1728_s16 = scalar_select %p1481_p3, 1, 0 }
  0x1a   : > { %1727 = sst [smem:[#allocation16_spill]] %s1477_s30  ;;  %p1114_p5 = scmp.lt.s32.totalorder %s1327_s28, 2 }
  0x1b   : > { %1729 = sst [smem:[#allocation17_spill]] %s1728_s16  ;;  %s397_s17 = sand.u32 1, %s1323_s27  }
  0x1c   : > { %s1068_s20 = sshll.u32 %s1327_s28, 3  ;;  %p46_p7 = por %p45_p0, %p44_p13 }
  0x1d   : > { %s1067_s1 = sshll.u32 %s397_s17, 3  ;;  %s405_s22 = scalar_lea.hbm %s1697_s0, %s1068_s20 }
  0x1e   : > { %s407_s18 = sshll.u32 %s405_s22, 4  ;;  %s401_s21 = scalar_lea.vmem [#allocation3], %s1067_s1  ;;  %s408_s18 = int_to_ptr.hbm [resolvable:$true] %s407_s18 }
  0x1f   : > { %s409_s24 = sshll.u32 %s401_s21, 4  ;;  %p1491_p10 = pnand %p1114_p5, %p46_p7  ;;  %s410_s24 = int_to_ptr.vmem [resolvable:$true] %s409_s24 }
  0x20   : > { %s398_s30 = scalar_lea.sflag [#allocation4], %s397_s17  ;;  %s1227_s16 = sshra.s32 %s408_s18, 4  ;;  %s1228_s16 = int_to_ptr.hbm [resolvable:$true] %s1227_s16 }
  0x21   : > { %s1229_s27 = scalar_lea.hbm %s1228_s16, 8  ;;  %p1231_p11 = pneg %p1491_p10 }
  0x22   : > { %p1230_p2 = scmp.ne.s32.totalorder %s1228_s16, %s1229_s27  ;;  %s1234_s1 = scalar_lea.hbm %s1697_s0, 16 }
  0x23   : > { %p1235_p0 = scmp.lt.s32.totalorder %s1228_s16, %s1697_s0  ;;  %p1236_p5 = scmp.lt.s32.totalorder %s1234_s1, %s1229_s27 }
  0x24   : > { %p1232_p12 = pnand %p1231_p11, %p1230_p2 }
  0x25   : > { %p1237_p7 = por %p1236_p5, %p1235_p0 }
  0x26   : > { %p1233_p13 = pneg %p1232_p12 }
  0x28   : > { %p1238_p9 = pnand %p1237_p7, %p1233_p13 }
  0x2a   : > { %1241 = shalt.err (!%p1238_p9)
}
  0x2b   : > { %1108 = dma.hbm_to_vmem [thread:$0]  (!%p1491_p10), %s408_s18, 128, %s410_s24, %s398_s30  }
  0x2c   : > { %418 = sbr.rel (%p1458_p8) target bundleno = 2049 (0x801), region = 72  ;;  %s1508_s17 = sand.u32 (!%p1458_p8), 1, %s1319_s26  }
  0x2d   : > { %s1070_s21 = sshll.u32 (!%p1458_p8), %s1508_s17, 3  ;;  %s421_s25 = scalar_lea.sflag (!%p1458_p8), [#allocation4], %s1508_s17 }
  0x2e   : > { %s424_s27 = scalar_lea.vmem (!%p1458_p8), [#allocation3], %s1070_s21 }
  0x31   : > { %1302 = dma.done.wait (%p1445_p4), %s421_s25, 128  }
  0x32   : > { %1304 = vsyncadd (%p1445_p4), %s421_s25, 4294967168 }
  0x33   : > { %1306 = dma.done.wait (%p51_p1), [#allocation7], 16  }
  0x34   : > { %1308 = vsyncadd (%p51_p1), [#allocation7], 4294967280  ;;  %vm476_vm0 = vcmask 261120   ;;  %v1522_v0 = vld [vmem:[%s424_s27] sm:$0xff]  ;;  %v1330_v2 = vmov 32.0   ;;  %v517_v14 = vld [vmem:[%s1700_s3 + $0x18] sm:$0xff] }
  0x35   : > { %v477_v1 = vsel %vm476_vm0, %v1522_v0, 0.0  ;;  %1173 = vrcp.f32 %v1330_v2  ;;  %537 = vmatpush.msra.mxu0 %v517_v14  ;;  %v516_v15 = vld [vmem:[%s1700_s3 + $0x10] sm:$0xff]  ;;  %v515_v16 = vld [vmem:[%s1700_s3 + $0x8] sm:$0xff]  ;;  %v514_v17 = vld [vmem:[%s1700_s3] sm:$0xff]  ;;  %s1331_s27 = smov 56   ;;  %s1332_s14 = smov 120  }
  0x36   : > { %478 = vadd.xlane.f32.xlu0 %v477_v1  ;;  %v1165_v27 = vld [vmem:[#allocation6] ss:$0 sm:$0xff]  ;;  %v1166_v30 = vld [vmem:[%s1699_s2] ss:$0 sm:$0xff]  ;;  %s1333_s19 = smov 96   ;;  %s1334_s30 = smov 88  }
  0x37   : > { %538 = vmatpush.msra.mxu0 %v516_v15  ;;  %v1167_v33 = vld [vmem:[%s1701_s4] ss:$0 sm:$0xff]  ;;  %s1335_s16 = smov 64   ;;  %s1336_s18 = smov 72   ;;  %vm548_vm5 = vcmask 64512   ;;  %vm680_vm6 = vcmask 130112  }
  0x38   : > { %s1337_s24 = smov 104   ;;  %s1338_s23 = smov 80   ;;  %vm751_vm7 = vcmask 195712   ;;  %vm822_vm8 = vcmask 261312   ;;  %vm941_vm12 = vcmask 523264  }
  0x39   : > { %539 = vmatpush.msra.mxu0 %v515_v16  ;;  %s1339_s15 = smov 112   ;;  %s1340_s1 = smov 48  }
  0x3a   : > { %s1341_s22 = smov 8   ;;  %s1342_s20 = smov 40  }
  0x3b   : > { %v1174_v3 = vpop.eup %1173  ;;  %540 = vmatpush.msra.mxu0 %v514_v17  ;;  %s1343_s25 = smov 16  }
  0x3c   : > { %v481_v4 = vmul.f32 32.0, %v1174_v3  ;;  %vm485_vm1 = vweird.f32 %v1174_v3 }
  0x3e   : > { %v482_v5 = vsub.f32 1.0, %v481_v4 }
  0x40   : > { %v483_v6 = vmul.f32 %v1174_v3, %v482_v5 }
  0x42   : > { %v484_v7 = vadd.f32 %v1174_v3, %v483_v6 }
  0x44   : > { %v1526_v8 = vsel %vm485_vm1, %v1174_v3, %v484_v7 }
  0xa9   : > { %v479_v9 = vpop.xlane.xlu0 %478 }
  0xaa   : > { %v487_v10 = vmul.f32 %v1526_v8, %v479_v9 }
  0xac   : > { %v488_v11 = vsub.f32 %v1522_v0, %v487_v10 }
  0xae   : > { %v489_v12 = vmul.f32 %v488_v11, %v488_v11 }
  0xb0   : > { %v490_v13 = vsel %vm476_vm0, %v489_v12, 0.0 }
  0xb1   : > { %491 = vadd.xlane.f32.xlu0 %v490_v13 }
 0x124   : > { %v492_v18 = vpop.xlane.xlu0 %491 }
 0x125   : > { %v493_v19 = vmul.f32 %v492_v18, %v1526_v8 }
 0x127   : > { %v494_v20 = vadd.f32 1e-05, %v493_v19 }
 0x129   : > { %1175 = vrsqrt.f32 %v494_v20  ;;  %vm501_vm3 = vweird.f32 %v494_v20 }
 0x12f   : > { %v1176_v21 = vpop.eup %1175 }
 0x130   : > { %v496_v22 = vmul.f32 %v1176_v21, %v494_v20  ;;  %vm502_vm2 = vweird.f32 %v1176_v21 }
 0x131   : > { %vm503_vm4 = vmor %vm501_vm3, %vm502_vm2 }
 0x132   : > { %v497_v23 = vmul.f32 %v1176_v21, %v496_v22 }
 0x134   : > { %v498_v24 = vmul.f32 0.5, %v497_v23 }
 0x136   : > { %v499_v25 = vsub.f32 1.5, %v498_v24 }
 0x138   : > { %v500_v26 = vmul.f32 %v1176_v21, %v499_v25 }
 0x13a   : > { %v504_v28 = vsel %vm503_vm4, %v1176_v21, %v500_v26 }
 0x13b   : > { %v505_v29 = vmul.f32 %v504_v28, %v488_v11 }
 0x13d   : > { %v509_v31 = vmul.f32 %v1165_v27, %v505_v29 }
 0x13f   : > { %v513_v32 = vadd.f32 %v1166_v30, %v509_v31  ;;  %v828_v30 = vld [vmem:[%s1702_s5 + $0x18] sm:$0xff]  ;;  %v827_v31 = vld [vmem:[%s1702_s5 + $0x10] sm:$0xff] }
 0x141   : > { %1073 = vmatmul.msk.f32.vlgmr.msra.gmra.mxu0 %vm476_vm0, %v513_v32  ;;  %v826_v32 = vld [vmem:[%s1702_s5 + $0x8] sm:$0xff] }
 0x1be   : > { %v542_v34 = vpop.f32.mrf.mxu0 }
 0x1bf   : > { %v1551_v35 = vadd.f32 %v1167_v33, %v542_v34  ;;  %v825_v33 = vld [vmem:[%s1702_s5] sm:$0xff] }
 0x1c1   : > { %648 = vrot.lane.b32.xlu0 %v1551_v35, %s1331_s27  ;;  %611 = vrot.lane.b32.xlu2 %v1551_v35, %s1332_s14  ;;  %s1344_s27 = smov 24  }
 0x1c2   : > { %546 = vrot.lane.b32.xlu1 %v1551_v35, %s1333_s19  ;;  %s1090_s19 = sshll.u32 %s1436_s29, 3  ;;  %s968_s29 = scalar_lea.sflag [#allocation5], %s1508_s17 }
 0x1ca   : > { %613 = vrot.lane.b32.xlu1 %v1551_v35, %s1334_s30 }
 0x1d2   : > { %582 = vrot.lane.b32.xlu1 %v1551_v35, %s1335_s16 }
 0x1da   : > { %755 = vrot.lane.b32.xlu1 %v1551_v35, %s1336_s18 }
 0x1e2   : > { %753 = vrot.lane.b32.xlu1 %v1551_v35, %s1337_s24 }
 0x1ea   : > { %684 = vrot.lane.b32.xlu1 %v1551_v35, %s1338_s23 }
 0x21b   : > { %v612_v38 = vpop.permute.xlu2 %611 }
 0x233   : > { %v649_v40 = vpop.permute.xlu0 %648 }
 0x234   : > { %v547_v36 = vpop.permute.xlu1 %546 }
 0x235   : > { %1074 = vmatpush.xpose.msk.msra.mxu1 %vm548_vm5, %v547_v36 }
 0x238   : > { %1075 = vmatmul.msk.f32.vlgmr.msra.gmra.mxu1 %vm548_vm5, %v1551_v35 }
 0x23c   : > { %v614_v37 = vpop.permute.xlu1 %613 }
 0x23d   : > { %1077 = vmatpush.xpose.msk.msra.mxu3 %vm548_vm5, %v614_v37  ;;  %v1168_v37 = vld [vmem:[%s1703_s6] ss:$0 sm:$0xff] }
 0x240   : > { %1078 = vmatmul.msk.f32.vlgmr.msra.gmra.mxu3 %vm548_vm5, %v612_v38 }
 0x244   : > { %v583_v39 = vpop.permute.xlu1 %582 }
 0x245   : > { %603 = vmatpush.msra.mxu2 %v583_v39 }
 0x247   : > { %669 = vmatpush.msrb.mxu2 %v649_v40 }
 0x24c   : > { %v756_v41 = vpop.permute.xlu1 %755 }
 0x254   : > { %v754_v42 = vpop.permute.xlu1 %753 }
 0x25c   : > { %v685_v43 = vpop.permute.xlu1 %684 }
 0x25d   : > { %1080 = vmatpush.xpose.msk.msrb.mxu1 %vm548_vm5, %v685_v43 }
 0x261   : > { %848 = vmatpush.msra.mxu1 %v828_v30 }
 0x263   : > { %849 = vmatpush.msra.mxu1 %v827_v31 }
 0x265   : > { %850 = vmatpush.msra.mxu1 %v826_v32 }
 0x267   : > { %851 = vmatpush.msra.mxu1 %v825_v33 }
 0x2b5   : > { %v570_v44 = vpop.f32.mrf.mxu1 }
 0x2b6   : > { %v573_v45 = vsel %vm548_vm5, %v570_v44, -inf }
 0x2b7   : > { %574 = vmax.xlane.f32.xlu2 %v573_v45 }
 0x2c3   : > { %v636_v46 = vpop.f32.mrf.mxu3 }
 0x2c4   : > { %v639_v47 = vsel %vm548_vm5, %v636_v46, -inf }
 0x2c5   : > { %640 = vmax.xlane.f32.xlu0 %v639_v47  ;;  %v892_v47 = vld [vmem:[%s1706_s9 + $0x18] sm:$0xff] }
 0x2d9   : > { %682 = vrot.lane.b32.xlu0 %v1551_v35, %s1339_s15  ;;  %s978_s15 = scalar_lea.hbm %s1710_s13, %s1090_s19 }
 0x2e1   : > { %719 = vrot.lane.b32.xlu0 %v1551_v35, %s1340_s1  ;;  %s472_s1 = scalar_lea.vmem [#allocation8], %s1070_s21  ;;  %s1277_s21 = scalar_lea.hbm %s1710_s13, 16 }
 0x32a   : > { %v575_v48 = vpop.xlane.xlu2 %574 }
 0x32b   : > { %v576_v49 = vsub.f32 %v570_v44, %v575_v48  ;;  %v890_v48 = vld [vmem:[%s1706_s9 + $0x8] sm:$0xff] }
 0x32d   : > { %v577_v50 = vmul.f32 1.442695, %v576_v49  ;;  %v889_v49 = vld [vmem:[%s1706_s9] sm:$0xff] }
 0x32f   : > { %1177 = vpow2.f32 %v577_v50 }
 0x335   : > { %v1178_v51 = vpop.eup %1177 }
 0x336   : > { %1076 = vmatmul.msk.f32.vlgmr.msra.gmra.mxu2 %vm548_vm5, %v1178_v51  ;;  %v579_v17 = vsel %vm548_vm5, %v1178_v51, 0.0 }
 0x337   : > { %1083 = vmatpush.xpose.msk.msra.mxu2 %vm548_vm5, %v756_v41 }
 0x338   : > { %v641_v52 = vpop.xlane.xlu0 %640 }
 0x339   : > { %v642_v53 = vsub.f32 %v636_v46, %v641_v52 }
 0x33b   : > { %v643_v54 = vmul.f32 1.442695, %v642_v53 }
 0x33d   : > { %1179 = vpow2.f32 %v643_v54 }
 0x343   : > { %v1180_v55 = vpop.eup %1179 }
 0x344   : > { %1079 = vmatmul.msk.f32.vlgmr.msrb.gmra.mxu2 %vm548_vm5, %v1180_v55  ;;  %v645_v56 = vsel %vm548_vm5, %v1180_v55, 0.0 }
 0x345   : > { %646 = vadd.xlane.f32.xlu0 %v645_v56 }
 0x34b   : > { %v683_v57 = vpop.permute.xlu0 %682 }
 0x34c   : > { %1081 = vmatmul.msk.f32.vlgmr.msrb.gmra.mxu1 %vm548_vm5, %v683_v57  ;;  %1084 = vmatmul.msk.f32.vlgmr.msra.gmra.mxu2 %vm548_vm5, %v754_v42 }
 0x353   : > { %v720_v58 = vpop.permute.xlu0 %719 }
 0x354   : > { %740 = vmatpush.msrb.mxu3 %v720_v58 }
 0x356   : > { %912 = vmatpush.msra.mxu3 %v892_v47 }
 0x3b8   : > { %v647_v59 = vpop.xlane.xlu0 %646 }
 0x3b9   : > { %v605_v60 = vpop.f32.mrf.mxu2  ;;  %1181 = vrcp.f32 %v647_v59  ;;  %v1169_v59 = vld [vmem:[%s1704_s7] ss:$0 sm:$0xff] }
 0x3bf   : > { %v1182_v61 = vpop.eup %1181 }
 0x3c7   : > { %v671_v62 = vpop.f32.mrf.mxu2 }
 0x3c8   : > { %v675_v63 = vmul.f32 %v1182_v61, %v671_v62 }
 0x3c9   : > { %v707_v1 = vpop.f32.mrf.mxu1 }
 0x3ca   : > { %677 = vrot.lane.b32.xlu0 %v675_v63, %s1341_s22  ;;  %v710_v2 = vsel %vm548_vm5, %v707_v1, -inf  ;;  %s980_s22 = sshll.u32 %s472_s1, 4  ;;  %s981_s22 = int_to_ptr.vmem [resolvable:$true] %s980_s22 }
 0x3cb   : > { %711 = vmax.xlane.f32.xlu1 %v710_v2  ;;  %v935_v2 = vld [vmem:[%s1708_s11 + $0x30] sm:$0xff] }
 0x3cf   : > { %v778_v3 = vpop.f32.mrf.mxu2 }
 0x3d0   : > { %v781_v4 = vsel %vm548_vm5, %v778_v3, -inf }
 0x3d1   : > { %782 = vmax.xlane.f32.xlu2 %v781_v4  ;;  %v933_v4 = vld [vmem:[%s1708_s11 + $0x20] sm:$0xff] }
 0x3e9   : > { %790 = vrot.lane.b32.xlu2 %v1551_v35, %s1342_s20  ;;  %s982_s20 = sshll.u32 %s978_s15, 4  ;;  %s983_s20 = int_to_ptr.hbm [resolvable:$true] %s982_s20 }
 0x43c   : > { %v678_v29 = vpop.permute.xlu0 %677 }
 0x43e   : > { %v712_v5 = vpop.xlane.xlu1 %711 }
 0x43f   : > { %v713_v6 = vsub.f32 %v707_v1, %v712_v5  ;;  %v936_v1 = vld [vmem:[%s1708_s11 + $0x38] sm:$0xff] }
 0x440   : > { %953 = vmatpush.msrb.mxu0 %v936_v1  ;;  %v932_v5 = vld [vmem:[%s1708_s11 + $0x18] sm:$0xff] }
 0x441   : > { %v714_v7 = vmul.f32 1.442695, %v713_v6  ;;  %v931_v6 = vld [vmem:[%s1708_s11 + $0x10] sm:$0xff] }
 0x442   : > { %954 = vmatpush.msrb.mxu0 %v935_v2 }
 0x443   : > { %1183 = vpow2.f32 %v714_v7  ;;  %v930_v7 = vld [vmem:[%s1708_s11 + $0x8] sm:$0xff] }
 0x444   : > { %v783_v9 = vpop.xlane.xlu2 %782 }
 0x445   : > { %v784_v10 = vsub.f32 %v778_v3, %v783_v9  ;;  %v934_v3 = vld [vmem:[%s1708_s11 + $0x28] sm:$0xff]  ;;  %v929_v9 = vld [vmem:[%s1708_s11] sm:$0xff] }
 0x446   : > { %955 = vmatpush.msrb.mxu0 %v934_v3 }
 0x447   : > { %v785_v11 = vmul.f32 1.442695, %v784_v10  ;;  %v1171_v10 = vld [vmem:[%s1707_s10] ss:$0 sm:$0xff] }
 0x448   : > { %956 = vmatpush.msrb.mxu0 %v933_v4 }
 0x449   : > { %v1184_v12 = vpop.eup %1183  ;;  %1185 = vpow2.f32 %v785_v11 }
 0x44a   : > { %1082 = vmatmul.msk.f32.vlgmr.msrb.gmra.mxu3 %vm548_vm5, %v1184_v12  ;;  %v716_v13 = vsel %vm548_vm5, %v1184_v12, 0.0  ;;  %957 = vmatpush.msrb.mxu0 %v932_v5 }
 0x44b   : > { %717 = vadd.xlane.f32.xlu2 %v716_v13 }
 0x44c   : > { %v791_v14 = vpop.permute.xlu2 %790  ;;  %958 = vmatpush.msrb.mxu0 %v931_v6 }
 0x44d   : > { %811 = vmatpush.msrb.mxu2 %v791_v14 }
 0x44e   : > { %959 = vmatpush.msrb.mxu0 %v930_v7 }
 0x44f   : > { %v1186_v15 = vpop.eup %1185 }
 0x450   : > { %1085 = vmatmul.msk.f32.vlgmr.msrb.gmra.mxu2 %vm548_vm5, %v1186_v15  ;;  %v787_v16 = vsel %vm548_vm5, %v1186_v15, 0.0  ;;  %960 = vmatpush.msrb.mxu0 %v929_v9 }
 0x451   : > { %788 = vadd.xlane.f32.xlu1 %v787_v16 }
 0x459   : > { %580 = vadd.xlane.f32.xlu1 %v579_v17 }
 0x4be   : > { %v718_v18 = vpop.xlane.xlu2 %717 }
 0x4bf   : > { %1187 = vrcp.f32 %v718_v18 }
 0x4c4   : > { %v789_v19 = vpop.xlane.xlu1 %788 }
 0x4c5   : > { %1189 = vrcp.f32 %v789_v19  ;;  %v1188_v21 = vpop.eup %1187 }
 0x4cb   : > { %v1190_v24 = vpop.eup %1189 }
 0x4cc   : > { %v581_v20 = vpop.xlane.xlu1 %580 }
 0x4cd   : > { %1191 = vrcp.f32 %v581_v20  ;;  %v742_v22 = vpop.f32.mrf.mxu3 }
 0x4ce   : > { %v746_v23 = vmul.f32 %v1188_v21, %v742_v22  ;;  %v1172_v22 = vld [vmem:[%s1709_s12] ss:$0 sm:$0xff] }
 0x4d0   : > { %748 = vrot.lane.b32.xlu1 %v746_v23, %s1343_s25  ;;  %s1271_s25 = sshra.s32 %s983_s20, 4  ;;  %s1272_s25 = int_to_ptr.hbm [resolvable:$true] %s1271_s25 }
 0x4d1   : > { %p1278_p9 = scmp.lt.s32.totalorder %s1272_s25, %s1710_s13 }
 0x4d3   : > { %v1192_v25 = vpop.eup %1191  ;;  %v813_v26 = vpop.f32.mrf.mxu2 }
 0x4d4   : > { %v609_v27 = vmul.f32 %v1192_v25, %v605_v60  ;;  %v817_v28 = vmul.f32 %v1190_v24, %v813_v26 }
 0x4d6   : > { %610 = vst.msk [vmem:[#allocation2] sm:$0xff] %vm548_vm5, %v609_v27  ;;  %819 = vrot.lane.b32.xlu0 %v817_v28, %s1344_s27  ;;  %s1273_s27 = scalar_lea.hbm %s1272_s25, 8 }
 0x4d7   : > { %681 = vst.msk [vmem:[#allocation2] sm:$0xff] %vm680_vm6, %v678_v29  ;;  %p1274_p1 = scmp.ne.s32.totalorder %s1272_s25, %s1273_s27  ;;  %p1279_p10 = scmp.lt.s32.totalorder %s1277_s21, %s1273_s27 }
 0x4d9   : > { %p1275_p4 = pnand %p1274_p1, %p1481_p3  ;;  %p1280_p2 = por %p1279_p10, %p1278_p9 }
 0x4db   : > { %p1276_p8 = pneg %p1275_p4 }
 0x4dd   : > { %p1281_p11 = pnand %p1280_p2, %p1276_p8 }
 0x542   : > { %v749_v34 = vpop.permute.xlu1 %748 }
 0x543   : > { %752 = vst.msk [vmem:[#allocation2] sm:$0xff] %vm751_vm7, %v749_v34 }
 0x548   : > { %v820_v35 = vpop.permute.xlu0 %819 }
 0x549   : > { %823 = vst.msk [vmem:[#allocation2] sm:$0xff] %vm822_vm8, %v820_v35 }
 0x550   : > { %v824_v36 = vld [vmem:[#allocation2] sm:$0xff] }
 0x551   : > { %1086 = vmatmul.msk.f32.vlgmr.msra.gmra.mxu1 %vm476_vm0, %v824_v36 }
 0x5ce   : > { %v853_v38 = vpop.f32.mrf.mxu1 }
 0x5cf   : > { %v854_v39 = vadd.f32 %v1168_v37, %v853_v38 }
 0x5d1   : > { %v1603_v40 = vadd.f32 %v854_v39, %v1522_v0  ;;  %v891_v0 = vld [vmem:[%s1706_s9 + $0x10] sm:$0xff] }
 0x5d2   : > { %913 = vmatpush.msra.mxu3 %v891_v0 }
 0x5d3   : > { %v859_v41 = vsel %vm476_vm0, %v1603_v40, 0.0 }
 0x5d4   : > { %860 = vadd.xlane.f32.xlu2 %v859_v41  ;;  %914 = vmatpush.msra.mxu3 %v890_v48 }
 0x5d6   : > { %915 = vmatpush.msra.mxu3 %v889_v49 }
 0x647   : > { %v861_v42 = vpop.xlane.xlu2 %860 }
 0x648   : > { %v862_v43 = vmul.f32 %v861_v42, %v1526_v8 }
 0x64a   : > { %v863_v44 = vsub.f32 %v1603_v40, %v862_v43 }
 0x64c   : > { %v864_v45 = vmul.f32 %v863_v44, %v863_v44 }
 0x64e   : > { %v865_v46 = vsel %vm476_vm0, %v864_v45, 0.0 }
 0x64f   : > { %866 = vadd.xlane.f32.xlu0 %v865_v46 }
 0x6c2   : > { %v867_v50 = vpop.xlane.xlu0 %866 }
 0x6c3   : > { %v868_v51 = vmul.f32 %v867_v50, %v1526_v8  ;;  %v1170_v8 = vld [vmem:[%s1705_s8] ss:$0 sm:$0xff] }
 0x6c5   : > { %v869_v52 = vadd.f32 1e-05, %v868_v51 }
 0x6c7   : > { %1193 = vrsqrt.f32 %v869_v52  ;;  %vm876_vm10 = vweird.f32 %v869_v52 }
 0x6cd   : > { %v1194_v53 = vpop.eup %1193 }
 0x6ce   : > { %v871_v54 = vmul.f32 %v1194_v53, %v869_v52  ;;  %vm877_vm9 = vweird.f32 %v1194_v53 }
 0x6cf   : > { %vm878_vm11 = vmor %vm876_vm10, %vm877_vm9 }
 0x6d0   : > { %v872_v55 = vmul.f32 %v1194_v53, %v871_v54 }
 0x6d2   : > { %v873_v56 = vmul.f32 0.5, %v872_v55 }
 0x6d4   : > { %v874_v57 = vsub.f32 1.5, %v873_v56 }
 0x6d6   : > { %v875_v58 = vmul.f32 %v1194_v53, %v874_v57 }
 0x6d8   : > { %v879_v60 = vsel %vm878_vm11, %v1194_v53, %v875_v58 }
 0x6d9   : > { %v880_v61 = vmul.f32 %v879_v60, %v863_v44 }
 0x6db   : > { %v884_v62 = vmul.f32 %v1169_v59, %v880_v61 }
 0x6dd   : > { %v888_v63 = vadd.f32 %v1170_v8, %v884_v62 }
 0x6df   : > { %1087 = vmatmul.msk.f32.vlgmr.msra.gmra.mxu3 %vm476_vm0, %v888_v63 }
 0x762   : > { %v917_v11 = vpop.f32.mrf.mxu3 }
 0x763   : > { %v918_v12 = vadd.f32 %v1171_v10, %v917_v11 }
 0x765   : > { %v920_v13 = vmul.f32 %v918_v12, %v918_v12 }
 0x767   : > { %v921_v14 = vmul.f32 %v920_v13, %v918_v12 }
 0x769   : > { %v922_v15 = vmul.f32 0.044715, %v921_v14 }
 0x76b   : > { %v923_v16 = vadd.f32 %v922_v15, %v918_v12 }
 0x76d   : > { %v924_v17 = vmul.f32 0.7978846, %v923_v16 }
 0x76f   : > { %1195 = vtanh.f32 %v924_v17 }
 0x775   : > { %v1196_v18 = vpop.eup %1195 }
 0x776   : > { %v926_v19 = vadd.f32 1.0, %v1196_v18 }
 0x778   : > { %v927_v20 = vmul.f32 0.5, %v926_v19 }
 0x77a   : > { %v928_v21 = vmul.f32 %v927_v20, %v918_v12 }
 0x77c   : > { %1088 = vmatmul.msk.f32.vlgmr.msrb.gmra.mxu0 %vm941_vm12, %v928_v21 }
 0x7f9   : > { %v962_v23 = vpop.f32.mrf.mxu0 }
 0x7fa   : > { %v963_v24 = vadd.f32 %v1172_v22, %v962_v23 }
 0x7fc   : > { %v965_v25 = vadd.f32 %v963_v24, %v1603_v40 }
 0x7fe   : > { %966 = vst.msk [vmem:[%s472_s1] sm:$0xff] %vm476_vm0, %v965_v25 }
 0x7ff   : > { %1284 = shalt.err (!%p1281_p11)
}
 0x800   : > { %1099 = dma.vmem_to_hbm [thread:$0]  (%p1481_p3), %s981_s22, 128, %s983_s20, %s968_s29  }
 0x801 PF: > { %s1732_s17 = sld [smem:[#allocation12_spill]]  ;;  %p1734_p12 = scmp.ge.s32.totalorder %s1327_s28, 2 }
 0x803   : > { %p1110_p13 = pnand %p1734_p12, %p1450_p6 }
 0x805   : > { %p1111_p0 = pneg %p1110_p13 }
 0x807   : > { %s994_s24 = sand.u32 1, %s1732_s17  }
 0x808   : > { %s995_s15 = scalar_lea.sflag [#allocation5], %s994_s24 }
 0x809   : > { %1310 = dma.done.wait (%p1111_p0), %s995_s15, 128  }
 0x80a   : > { %1312 = vsyncadd (%p1111_p0), %s995_s15, 4294967168  ;;  %s1735_s28 = sld [smem:[#allocation15_spill]]  ;;  %s1738_s25 = smov %s1319_s26 }
 0x80b   : > { %s1736_s1 = sld [smem:[#allocation13_spill]] }
 0x80c   : > { %s1737_s27 = sld [smem:[#allocation16_spill]] }
 0x810   : > { %p27_p5 = scmp.ge.s32.totalorder %s1735_s28, 4  }
 0x811   : > { %s1739_s26 = smov %s1736_s1 }
 0x812   :  { %29 = sbr.rel (!%p27_p5) target bundleno = 8 (0x8), region = 121 }
 0x817   :  { %1001 = vsyncpa [#allocation4], 1 }
 0x818   :  { %1003 = vsyncpa [#allocation4 + $0x1], 1 }
 0x819   :  { %1004 = vsyncpa [#allocation7], 1 }
 0x81a   :  { %1005 = vsyncpa [#allocation5], 1 }
 0x81b   :  { %1007 = vsyncpa [#allocation5 + $0x1], 1 }

</bundles_post_ra>
